<compile_context>
chip_gen: v6e
topology: v6e:2x2x1
jax: 0.10.0
libtpu: 0.0.40
codegen_flags: <defaults>
</compile_context>

<pallas_src>
import jax
import jax.numpy as jnp
import numpy as np
from jax.experimental import pallas as pl
from jax.experimental.pallas import tpu as pltpu


# ----------------------------------------------------------------------------- utils
def _round_up(x, m):
    return (x + m - 1) // m * m


def _pad_to(a, shape, value=0.0):
    pads = [(0, s - d) for d, s in zip(a.shape, shape)]
    if all(p == (0, 0) for p in pads):
        return a
    return jnp.pad(a, pads, constant_values=value)


def _device_kind():
    try:
        return jax.devices()[0].device_kind.lower()
    except Exception:
        return ""


# ----------------------------------------------------------------------------- kernel
def ffnn_kernel(x_ref, w1_ref, b1_ref, w2_ref, b2_ref, o_ref):
    # x streamed as f32 (no wrapper-side bf16 copy -> half the x HBM traffic);
    # bf16 cast for the MXU happens here on the VPU, which has slack.
    x = x_ref[...].astype(jnp.bfloat16)

    # hidden = ReLU(x @ W1 + b1): bf16 MXU inputs, f32 accumulation, f32 bias.
    h = jnp.dot(x, w1_ref[...], preferred_element_type=jnp.float32)
    h = jnp.maximum(h + b1_ref[...], 0.0)

    # logits = hidden @ W2 + b2 (hidden re-cast to bf16 for the MXU).
    s = jnp.dot(h.astype(jnp.bfloat16), w2_ref[...],
                preferred_element_type=jnp.float32)
    s = s + b2_ref[...]

    # log_softmax over features (PyTorch dim=1).  Padded output lanes carry a
    # -1e30 bias, so exp(s - m) underflows to exactly 0 there; real lanes exact.
    # max/sum use the XLU, exp/log the EUP -> off the MXU/VPU critical path.
    m = jnp.max(s, axis=-1, keepdims=True)
    e = jnp.exp(s - m)
    lse = jnp.log(jnp.sum(e, axis=-1, keepdims=True)) + m
    o_ref[...] = (s - lse).astype(o_ref.dtype)


# ------------------------------------------------------------------- one-time weight prep
def prepare_ffnn_params(w1, b1, w2, b2):
    """Pad + cast weights ONCE (call at model init, not per forward).

    * D (contraction) and H zero-padded to lane-dense multiples of 128: zero
      x columns / W1 rows / W2 rows contribute nothing -> numerically exact.
    * On v6e/v7x, H strictly above 128 is rounded to a multiple of 256 (MXU is
      2x256x256 there); on v5e 128 is already native.
    * O padded to 128 with b2 = -1e30 (finite) on padded lanes so those logits
      vanish in the softmax; real lanes are exact and sliced off in the wrapper.
    """
    D, H = w1.shape
    O = w2.shape[1]

    kind = _device_kind()
    prefer_256 = ("v6" in kind) or ("v7" in kind)

    Dp = _round_up(max(D, 1), 128)
    Hp = _round_up(max(H, 1), 128)
    if prefer_256 and H > 128 and Hp % 256 != 0:
        Hp = _round_up(H, 256)
    Op = _round_up(max(O, 1), 128)

    w1p = _pad_to(w1, (Dp, Hp)).astype(jnp.bfloat16)
    b1p = _pad_to(jnp.reshape(b1, (1, -1)), (1, Hp)).astype(jnp.float32)
    w2p = _pad_to(w2, (Hp, Op)).astype(jnp.bfloat16)
    b2p = _pad_to(jnp.reshape(b2, (1, -1)), (1, Op), value=-1e30).astype(jnp.float32)

    return dict(w1=w1p, b1=b1p, w2=w2p, b2=b2p,
                D=D, H=H, O=O, Dp=Dp, Hp=Hp, Op=Op)


# ----------------------------------------------------------------- tiling / VMEM budgeting
_SOFT_VMEM_CAP = 40 << 20   # stay well inside v7x's 64 MiB per-TC VMEM


def _weight_bytes(p):
    return (p["Dp"] * p["Hp"] + p["Hp"] * p["Op"]) * 2 + (p["Hp"] + p["Op"]) * 4


def _vmem_bytes(tile_b, p, weight_buffers):
    x_tiles = 2 * tile_b * p["Dp"] * 4        # double-buffered f32 x tile
    out_tiles = 2 * tile_b * p["Op"] * 4      # double-buffered f32 out tile
    h_scratch = tile_b * p["Hp"] * 6          # f32 hidden + bf16 copy
    return x_tiles + out_tiles + h_scratch + weight_buffers * _weight_bytes(p)


def _pick_tile_b(B, p):
    cap = 1024 if "v6" in _device_kind() else 512
    if B < 32:
        tile_b = _round_up(max(B, 1), 16)
    else:
        # >= 2 grid steps so the "parallel" batch axis can shard across both
        # TensorCores on v7x (a single extra ~0.35us step is harmless on 1-TC chips).
        tile_b = min(cap, _round_up((B + 1) // 2, 16))
    # Shrink if the VMEM budget (with single-buffered weights) would be too big.
    while tile_b > 64 and _vmem_bytes(tile_b, p, 1) > _SOFT_VMEM_CAP:
        tile_b = _round_up(tile_b // 2, 16)
    return tile_b


# ----------------------------------------------------------------------------- forward
def _build_ffnn_call(tile_b, Bp, p, single_buffer_weights):
    Dp, Hp, Op = p["Dp"], p["Hp"], p["Op"]
    weight_buffers = 1 if single_buffer_weights else 2

    def const_spec(shape):
        if single_buffer_weights:
            # Grid-invariant operands: no need to double-buffer the resident weights.
            return pl.BlockSpec(shape, lambda i: (0, 0),
                                pipeline_mode=pl.Buffered(1))
        return pl.BlockSpec(shape, lambda i: (0, 0))

    vmem_limit = int(min(max(1.5 * _vmem_bytes(tile_b, p, weight_buffers), 32 << 20)
                         + (4 << 20), 64 << 20))

    cost = pl.CostEstimate(
        flops=2 * Bp * (Dp * Hp + Hp * Op),
        transcendentals=Bp * Op,
        bytes_accessed=Bp * Dp * 4 + _weight_bytes(p) + Bp * Op * 4)

    return pl.pallas_call(
        ffnn_kernel,
        out_shape=jax.ShapeDtypeStruct((Bp, Op), jnp.float32),
        grid_spec=pl.GridSpec(
            grid=(Bp // tile_b,),
            in_specs=[
                pl.BlockSpec((tile_b, Dp), lambda i: (i, 0)),   # x tile (streamed)
                const_spec((Dp, Hp)),                           # W1 (resident)
                const_spec((1, Hp)),                            # b1
                const_spec((Hp, Op)),                           # W2 (resident)
                const_spec((1, Op)),                            # b2
            ],
            out_specs=pl.BlockSpec((tile_b, Op), lambda i: (i, 0)),  # lane-dense store
        ),
        compiler_params=pltpu.CompilerParams(
            dimension_semantics=("parallel",),
            vmem_limit_bytes=vmem_limit),
        cost_estimate=cost,
    )


def ffnn_forward(x, params, *, tile_b=None):
    """x:(B,D) f32, params from prepare_ffnn_params -> (B,O) f32 log-probs."""
    B, D = x.shape
    assert D == params["D"], "input feature dim mismatch"
    Dp, O = params["Dp"], params["O"]

    if tile_b is None:
        tile_b = _pick_tile_b(B, params)
    tile_b = max(16, _round_up(tile_b, 16))
    Bp = _round_up(B, tile_b)

    # Zero-pad only the batch tail and the contraction dim D (lane-dense 128);
    # exact, and x stays f32 (bf16 cast happens inside the kernel).
    xp = _pad_to(x.astype(jnp.float32), (Bp, Dp))

    last_err = None
    for single_buffer in (True, False):
        try:
            call = _build_ffnn_call(tile_b, Bp, params, single_buffer)
            out_padded = call(xp, params["w1"], params["b1"],
                              params["w2"], params["b2"])
            return out_padded[:B, :O]
        except Exception as e:  # fallback if Buffered(1) is unsupported in this build
            last_err = e
    raise last_err


# ----------------------------------------------------------------------------- demo / check
def _init_linear(kw, kb, fan_in, fan_out):
    # Mimics torch.nn.Linear default init (uniform +-1/sqrt(fan_in)).
    bound = 1.0 / np.sqrt(fan_in)
    w = jax.random.uniform(kw, (fan_in, fan_out), jnp.float32, -bound, bound)
    b = jax.random.uniform(kb, (1, fan_out), jnp.float32, -bound, bound)
    return w, b


def _ref_f32(x, w1, b1, w2, b2):
    h = jnp.maximum(x @ w1 + b1.reshape(1, -1), 0.0)
    s = h @ w2 + b2.reshape(1, -1)
    return jax.nn.log_softmax(s, axis=1)


def _ref_bf16(x, w1, b1, w2, b2):
    # Mirrors the kernel's bf16 MXU inputs / f32 accumulation for a tight check.
    q = lambda a: a.astype(jnp.bfloat16).astype(jnp.float32)
    h = jnp.maximum(q(x) @ q(w1) + b1.reshape(1, -1), 0.0)
    s = q(h) @ q(w2) + b2.reshape(1, -1)
    return jax.nn.log_softmax(s, axis=1)


if __name__ == "__main__":
    input_dim = 32
    hidden = 32
    output_dim = 5
    batch = 8

    key = jax.random.PRNGKey(0)
    kx, k1w, k1b, k2w, k2b = jax.random.split(key, 5)

    x = jax.random.normal(kx, (batch, input_dim), jnp.float32)
    w1, b1 = _init_linear(k1w, k1b, input_dim, hidden)
    w2, b2 = _init_linear(k2w, k2b, hidden, output_dim)

    # Pad/cast weights once (init-time), then run the fused kernel.
    params = prepare_ffnn_params(w1, b1, w2, b2)
    out = jax.block_until_ready(ffnn_forward(x, params))
    assert out.shape == (batch, output_dim)

    # Tight check against a reference with matching bf16 input quantization.
    np.testing.assert_allclose(np.asarray(out),
                               np.asarray(_ref_bf16(x, w1, b1, w2, b2)),
                               rtol=1e-3, atol=1e-3)
    # Looser sanity check against the full-f32 reference (bf16 rounding noise).
    np.testing.assert_allclose(np.asarray(out),
                               np.asarray(_ref_f32(x, w1, b1, w2, b2)),
                               rtol=5e-2, atol=5e-2)

    print("KERNEL_OK")
</pallas_src>

<mosaic_0001>
module attributes {stable_mosaic.version = 11 : i64} {
  func.func @ffnn_kernel(%arg0: i32, %arg1: memref<16x128xf32, #tpu.memory_space<vmem>>, %arg2: memref<128x128xbf16, #tpu.memory_space<vmem>>, %arg3: memref<1x128xf32, #tpu.memory_space<vmem>>, %arg4: memref<128x128xbf16, #tpu.memory_space<vmem>>, %arg5: memref<1x128xf32, #tpu.memory_space<vmem>>, %arg6: memref<16x128xf32, #tpu.memory_space<vmem>>) attributes {dimension_semantics = [#tpu.dimension_semantics<parallel>], iteration_bounds = array<i64: 1>, scalar_prefetch = 0 : i64, scratch_operands = 0 : i64, tpu.core_type = #tpu.core_type<tc>, window_params = [{transform_indices = @transform_0, window_bounds = array<i64: 16, 128>}, {pipeline_mode = #tpu.pipeline_mode<synchronous>, transform_indices = @transform_1, window_bounds = array<i64: 128, 128>}, {pipeline_mode = #tpu.pipeline_mode<synchronous>, transform_indices = @transform_2, window_bounds = array<i64: 1, 128>}, {pipeline_mode = #tpu.pipeline_mode<synchronous>, transform_indices = @transform_3, window_bounds = array<i64: 128, 128>}, {pipeline_mode = #tpu.pipeline_mode<synchronous>, transform_indices = @transform_4, window_bounds = array<i64: 1, 128>}, {transform_indices = @transform_5, window_bounds = array<i64: 16, 128>}]} {
    %c0 = arith.constant 0 : index
    %c0_0 = arith.constant 0 : index
    %0 = vector.load %arg1[%c0, %c0_0] : memref<16x128xf32, #tpu.memory_space<vmem>>, vector<16x128xf32>
    %1 = arith.truncf %0 : vector<16x128xf32> to vector<16x128xbf16>
    %c0_1 = arith.constant 0 : index
    %c0_2 = arith.constant 0 : index
    %2 = vector.load %arg2[%c0_1, %c0_2] : memref<128x128xbf16, #tpu.memory_space<vmem>>, vector<128x128xbf16>
    %cst = arith.constant dense<0.000000e+00> : vector<16x128xf32>
    %3 = tpu.matmul %1, %2, %cst {dimension_numbers = #tpu.dot_dimension_numbers<[1], [0], [0], [1], [0, 0, 1, 1], [], []>} : vector<16x128xbf16>, vector<128x128xbf16>, vector<16x128xf32> -> vector<16x128xf32>
    %c0_3 = arith.constant 0 : index
    %c0_4 = arith.constant 0 : index
    %4 = vector.load %arg3[%c0_3, %c0_4] : memref<1x128xf32, #tpu.memory_space<vmem>>, vector<1x128xf32>
    %5 = vector.broadcast %4 : vector<1x128xf32> to vector<16x128xf32>
    %6 = arith.addf %3, %5 : vector<16x128xf32>
    %cst_5 = arith.constant 0.000000e+00 : f32
    %7 = vector.broadcast %cst_5 : f32 to vector<16x128xf32>
    %8 = arith.maximumf %6, %7 : vector<16x128xf32>
    %9 = arith.truncf %8 : vector<16x128xf32> to vector<16x128xbf16>
    %c0_6 = arith.constant 0 : index
    %c0_7 = arith.constant 0 : index
    %10 = vector.load %arg4[%c0_6, %c0_7] : memref<128x128xbf16, #tpu.memory_space<vmem>>, vector<128x128xbf16>
    %cst_8 = arith.constant dense<0.000000e+00> : vector<16x128xf32>
    %11 = tpu.matmul %9, %10, %cst_8 {dimension_numbers = #tpu.dot_dimension_numbers<[1], [0], [0], [1], [0, 0, 1, 1], [], []>} : vector<16x128xbf16>, vector<128x128xbf16>, vector<16x128xf32> -> vector<16x128xf32>
    %c0_9 = arith.constant 0 : index
    %c0_10 = arith.constant 0 : index
    %12 = vector.load %arg5[%c0_9, %c0_10] : memref<1x128xf32, #tpu.memory_space<vmem>>, vector<1x128xf32>
    %13 = vector.broadcast %12 : vector<1x128xf32> to vector<16x128xf32>
    %14 = arith.addf %11, %13 : vector<16x128xf32>
    %cst_11 = arith.constant dense<0xFF800000> : vector<16xf32>
    %15 = vector.multi_reduction <maximumf>, %14, %cst_11 [1] : vector<16x128xf32> to vector<16xf32>
    %16 = vector.shape_cast %15 : vector<16xf32> to vector<16x1xf32>
    %17 = vector.broadcast %16 : vector<16x1xf32> to vector<16x128xf32>
    %18 = arith.subf %14, %17 : vector<16x128xf32>
    %19 = math.exp %18 : vector<16x128xf32>
    %cst_12 = arith.constant dense<0.000000e+00> : vector<16xf32>
    %20 = vector.multi_reduction <add>, %19, %cst_12 [1] : vector<16x128xf32> to vector<16xf32>
    %21 = vector.shape_cast %20 : vector<16xf32> to vector<16x1xf32>
    %22 = math.log %21 : vector<16x1xf32>
    %23 = arith.addf %22, %16 : vector<16x1xf32>
    %24 = vector.broadcast %23 : vector<16x1xf32> to vector<16x128xf32>
    %25 = arith.subf %14, %24 : vector<16x128xf32>
    %c0_13 = arith.constant 0 : index
    %c0_14 = arith.constant 0 : index
    %26 = vector.load %arg6[%c0_13, %c0_14] : memref<16x128xf32, #tpu.memory_space<vmem>>, vector<16x128xf32>
    tpu.vector_store %arg6[%c0_13, %c0_14], %25 {strides = array<i32>} : memref<16x128xf32, #tpu.memory_space<vmem>>, vector<16x128xf32>,
    return
  }
  func.func @transform_0(%arg0: i32) -> (i32, i32) {
    %c0_i32 = arith.constant 0 : i32
    %c0_i32_0 = arith.constant 0 : i32
    return %arg0, %c0_i32 : i32, i32
  }
  func.func @transform_1(%arg0: i32) -> (i32, i32) {
    %c0_i32 = arith.constant 0 : i32
    %c0_i32_0 = arith.constant 0 : i32
    %c0_i32_1 = arith.constant 0 : i32
    return %c0_i32, %c0_i32_0 : i32, i32
  }
  func.func @transform_2(%arg0: i32) -> (i32, i32) {
    %c0_i32 = arith.constant 0 : i32
    %c0_i32_0 = arith.constant 0 : i32
    %c0_i32_1 = arith.constant 0 : i32
    return %c0_i32, %c0_i32_0 : i32, i32
  }
  func.func @transform_3(%arg0: i32) -> (i32, i32) {
    %c0_i32 = arith.constant 0 : i32
    %c0_i32_0 = arith.constant 0 : i32
    %c0_i32_1 = arith.constant 0 : i32
    return %c0_i32, %c0_i32_0 : i32, i32
  }
  func.func @transform_4(%arg0: i32) -> (i32, i32) {
    %c0_i32 = arith.constant 0 : i32
    %c0_i32_0 = arith.constant 0 : i32
    %c0_i32_1 = arith.constant 0 : i32
    return %c0_i32, %c0_i32_0 : i32, i32
  }
  func.func @transform_5(%arg0: i32) -> (i32, i32) {
    %c0_i32 = arith.constant 0 : i32
    %c0_i32_0 = arith.constant 0 : i32
    return %arg0, %c0_i32 : i32, i32
  }
}

module attributes {stable_mosaic.version = 11 : i64} {
  func.func @ffnn_kernel(%arg0: i32, %arg1: memref<16x128xf32, #tpu.memory_space<vmem>>, %arg2: memref<128x128xbf16, #tpu.memory_space<vmem>>, %arg3: memref<1x128xf32, #tpu.memory_space<vmem>>, %arg4: memref<128x128xbf16, #tpu.memory_space<vmem>>, %arg5: memref<1x128xf32, #tpu.memory_space<vmem>>, %arg6: memref<16x128xf32, #tpu.memory_space<vmem>>) attributes {dimension_semantics = [#tpu.dimension_semantics<parallel>], iteration_bounds = array<i64: 1>, scalar_prefetch = 0 : i64, scratch_operands = 0 : i64, tpu.core_type = #tpu.core_type<tc>, window_params = [{transform_indices = @transform_0, window_bounds = array<i64: 16, 128>}, {pipeline_mode = #tpu.pipeline_mode<synchronous>, transform_indices = @transform_1, window_bounds = array<i64: 128, 128>}, {pipeline_mode = #tpu.pipeline_mode<synchronous>, transform_indices = @transform_2, window_bounds = array<i64: 1, 128>}, {pipeline_mode = #tpu.pipeline_mode<synchronous>, transform_indices = @transform_3, window_bounds = array<i64: 128, 128>}, {pipeline_mode = #tpu.pipeline_mode<synchronous>, transform_indices = @transform_4, window_bounds = array<i64: 1, 128>}, {transform_indices = @transform_5, window_bounds = array<i64: 16, 128>}]} {
    %c0 = arith.constant 0 : index
    %c0_0 = arith.constant 0 : index
    %0 = vector.load %arg1[%c0, %c0_0] : memref<16x128xf32, #tpu.memory_space<vmem>>, vector<16x128xf32>
    %1 = arith.truncf %0 : vector<16x128xf32> to vector<16x128xbf16>
    %c0_1 = arith.constant 0 : index
    %c0_2 = arith.constant 0 : index
    %2 = vector.load %arg2[%c0_1, %c0_2] : memref<128x128xbf16, #tpu.memory_space<vmem>>, vector<128x128xbf16>
    %cst = arith.constant dense<0.000000e+00> : vector<16x128xf32>
    %3 = tpu.matmul %1, %2, %cst {dimension_numbers = #tpu.dot_dimension_numbers<[1], [0], [0], [1], [0, 0, 1, 1], [], []>} : vector<16x128xbf16>, vector<128x128xbf16>, vector<16x128xf32> -> vector<16x128xf32>
    %c0_3 = arith.constant 0 : index
    %c0_4 = arith.constant 0 : index
    %4 = vector.load %arg3[%c0_3, %c0_4] : memref<1x128xf32, #tpu.memory_space<vmem>>, vector<1x128xf32>
    %5 = vector.broadcast %4 : vector<1x128xf32> to vector<16x128xf32>
    %6 = arith.addf %3, %5 : vector<16x128xf32>
    %cst_5 = arith.constant 0.000000e+00 : f32
    %7 = vector.broadcast %cst_5 : f32 to vector<16x128xf32>
    %8 = arith.maximumf %6, %7 : vector<16x128xf32>
    %9 = arith.truncf %8 : vector<16x128xf32> to vector<16x128xbf16>
    %c0_6 = arith.constant 0 : index
    %c0_7 = arith.constant 0 : index
    %10 = vector.load %arg4[%c0_6, %c0_7] : memref<128x128xbf16, #tpu.memory_space<vmem>>, vector<128x128xbf16>
    %cst_8 = arith.constant dense<0.000000e+00> : vector<16x128xf32>
    %11 = tpu.matmul %9, %10, %cst_8 {dimension_numbers = #tpu.dot_dimension_numbers<[1], [0], [0], [1], [0, 0, 1, 1], [], []>} : vector<16x128xbf16>, vector<128x128xbf16>, vector<16x128xf32> -> vector<16x128xf32>
    %c0_9 = arith.constant 0 : index
    %c0_10 = arith.constant 0 : index
    %12 = vector.load %arg5[%c0_9, %c0_10] : memref<1x128xf32, #tpu.memory_space<vmem>>, vector<1x128xf32>
    %13 = vector.broadcast %12 : vector<1x128xf32> to vector<16x128xf32>
    %14 = arith.addf %11, %13 : vector<16x128xf32>
    %cst_11 = arith.constant dense<0xFF800000> : vector<16xf32>
    %15 = vector.multi_reduction <maximumf>, %14, %cst_11 [1] : vector<16x128xf32> to vector<16xf32>
    %16 = vector.shape_cast %15 : vector<16xf32> to vector<16x1xf32>
    %17 = vector.broadcast %16 : vector<16x1xf32> to vector<16x128xf32>
    %18 = arith.subf %14, %17 : vector<16x128xf32>
    %19 = math.exp %18 : vector<16x128xf32>
    %cst_12 = arith.constant dense<0.000000e+00> : vector<16xf32>
    %20 = vector.multi_reduction <add>, %19, %cst_12 [1] : vector<16x128xf32> to vector<16xf32>
    %21 = vector.shape_cast %20 : vector<16xf32> to vector<16x1xf32>
    %22 = math.log %21 : vector<16x1xf32>
    %23 = arith.addf %22, %16 : vector<16x1xf32>
    %24 = vector.broadcast %23 : vector<16x1xf32> to vector<16x128xf32>
    %25 = arith.subf %14, %24 : vector<16x128xf32>
    %c0_13 = arith.constant 0 : index
    %c0_14 = arith.constant 0 : index
    %26 = vector.load %arg6[%c0_13, %c0_14] : memref<16x128xf32, #tpu.memory_space<vmem>>, vector<16x128xf32>
    tpu.vector_store %arg6[%c0_13, %c0_14], %25 {strides = array<i32>} : memref<16x128xf32, #tpu.memory_space<vmem>>, vector<16x128xf32>,
    return
  }
  func.func @transform_0(%arg0: i32) -> (i32, i32) {
    %c0_i32 = arith.constant 0 : i32
    %c0_i32_0 = arith.constant 0 : i32
    return %arg0, %c0_i32 : i32, i32
  }
  func.func @transform_1(%arg0: i32) -> (i32, i32) {
    %c0_i32 = arith.constant 0 : i32
    %c0_i32_0 = arith.constant 0 : i32
    %c0_i32_1 = arith.constant 0 : i32
    return %c0_i32, %c0_i32_0 : i32, i32
  }
  func.func @transform_2(%arg0: i32) -> (i32, i32) {
    %c0_i32 = arith.constant 0 : i32
    %c0_i32_0 = arith.constant 0 : i32
    %c0_i32_1 = arith.constant 0 : i32
    return %c0_i32, %c0_i32_0 : i32, i32
  }
  func.func @transform_3(%arg0: i32) -> (i32, i32) {
    %c0_i32 = arith.constant 0 : i32
    %c0_i32_0 = arith.constant 0 : i32
    %c0_i32_1 = arith.constant 0 : i32
    return %c0_i32, %c0_i32_0 : i32, i32
  }
  func.func @transform_4(%arg0: i32) -> (i32, i32) {
    %c0_i32 = arith.constant 0 : i32
    %c0_i32_0 = arith.constant 0 : i32
    %c0_i32_1 = arith.constant 0 : i32
    return %c0_i32, %c0_i32_0 : i32, i32
  }
  func.func @transform_5(%arg0: i32) -> (i32, i32) {
    %c0_i32 = arith.constant 0 : i32
    %c0_i32_0 = arith.constant 0 : i32
    return %arg0, %c0_i32 : i32, i32
  }
}

</mosaic_0001>

<bundles_post_ra>
// kernel: tpu_custom_call.1
= control target key start
LH: loop header
LB: loop body
LE: loop exit
PB: predicated region body
PF: predicated region fallthrough
CT: control target
= control target key end

     0   :  { %10 = vsyncpa [#allocation3], 0  ;;  %s595_s0 = inlined_call_operand.hbm [shape: f32[16,128], index: 0, kind: input, shape index: {}]   ;;  %s596_s1 = inlined_call_operand.hbm [shape: bf16[128,128], index: 1, kind: input, shape index: {}]   ;;  %s597_s2 = inlined_call_operand.vmem [shape: f32[1,128], index: 2, kind: input, shape index: {}]   ;;  %s598_s3 = inlined_call_operand.hbm [shape: bf16[128,128], index: 3, kind: input, shape index: {}]   ;;  %s599_s4 = inlined_call_operand.vmem [shape: f32[1,128], index: 4, kind: input, shape index: {}]   ;;  %s600_s5 = inlined_call_operand.hbm [shape: f32[16,128], index: 5, kind: output, shape index: {}]  }
   0x1   :  { %11 = vsyncpa [#allocation6], 0 }
   0x2   :  { %12 = vsyncpa [#allocation4], 0  ;;  %s531_s18 = smov [#allocation5]  }
   0x3   :  { %s30_s19 = sshll.u32 %s531_s18, 4  ;;  %s31_s19 = int_to_ptr.vmem [resolvable:$true] %s30_s19 }
   0x4   :  { %s453_s20 = scalar_lea.vmem %s31_s19, 1024  ;;  %p458_p1 = scmp.lt.s32.totalorder %s31_s19, %s31_s19 }
   0x5   :  { %p454_p0 = scmp.ne.s32.totalorder %s31_s19, %s453_s20  ;;  %p459_p2 = scmp.lt.s32.totalorder %s453_s20, %s453_s20 }
   0x7   :  { %p460_p3 = por %p459_p2, %p458_p1 }
   0x9   :  { %p461_p4 = pnand %p460_p3, %p454_p0 }
   0xb   :  { %464 = shalt.err (!%p461_p4)
}
   0xc   :  { %s532_s21 = smov 64   ;;  %s533_s22 = smov 4  }
   0xd   :  { %36 = dma.hbm_to_vmem [thread:$0]  %s596_s1, 1024, %s31_s19, [#allocation6], %s532_s21, %s532_s21, %s533_s22  }
   0xe   :  { %s534_s25 = smov [#allocation2]  }
   0xf   :  { %s18_s26 = sshll.u32 %s534_s25, 4  ;;  %s19_s26 = int_to_ptr.vmem [resolvable:$true] %s18_s26 }
  0x10   :  { %s473_s27 = scalar_lea.vmem %s19_s26, 256  ;;  %p478_p6 = scmp.lt.s32.totalorder %s19_s26, %s19_s26 }
  0x11   :  { %p474_p5 = scmp.ne.s32.totalorder %s19_s26, %s473_s27  ;;  %p479_p7 = scmp.lt.s32.totalorder %s473_s27, %s473_s27 }
  0x13   :  { %p480_p8 = por %p479_p7, %p478_p6 }
  0x15   :  { %p481_p9 = pnand %p480_p8, %p474_p5 }
  0x17   :  { %484 = shalt.err (!%p481_p9)
}
  0x18   :  { %s535_s28 = smov 128   ;;  %s536_s29 = smov 8  }
  0x19   :  { %24 = dma.hbm_to_vmem [thread:$0]  %s595_s0, 256, %s19_s26, [#allocation3], %s535_s28, %s535_s28, %s536_s29  }
  0x1a   :  { %s537_s1 = smov [#allocation7]  }
  0x1b   :  { %s44_s7 = sshll.u32 %s537_s1, 4  ;;  %s45_s7 = int_to_ptr.vmem [resolvable:$true] %s44_s7 }
  0x1c   :  { %s493_s8 = scalar_lea.vmem %s45_s7, 1024  ;;  %p498_p11 = scmp.lt.s32.totalorder %s45_s7, %s45_s7 }
  0x1d   :  { %p494_p10 = scmp.ne.s32.totalorder %s45_s7, %s493_s8  ;;  %p499_p12 = scmp.lt.s32.totalorder %s493_s8, %s493_s8 }
  0x1f   :  { %p500_p13 = por %p499_p12, %p498_p11 }
  0x21   :  { %p501_p0 = pnand %p500_p13, %p494_p10 }
  0x23   :  { %504 = shalt.err (!%p501_p0)
}
  0x24   :  { %50 = dma.hbm_to_vmem [thread:$0]  %s598_s3, 1024, %s45_s7, [#allocation6], %s532_s21, %s532_s21, %s533_s22  }
  0x25   :  { %525 = dma.done.wait [#allocation3], 256  }
  0x26   :  { %526 = vsyncadd [#allocation3], 4294967040 }
  0x27   :  { %527 = dma.done.wait [#allocation6], 2048  }
  0x28   :  { %528 = vsyncadd [#allocation6], 4294965248  ;;  %v538_v0 = vmov 0.0   ;;  %vm539_vm0 = vmmov 0   ;;  %v421_v1 = vld [vmem:[#allocation5 + $0x38] sm:$0xff]   ;;  %v422_v2 = vld [vmem:[#allocation5 + $0x30] sm:$0xff]  }
  0x29   :  { %371 = vmatprep.subr.bf16.mxu0 %v538_v0  ;;  %387 = vmatprep.mubr.msk.bf16.mxu0 %vm539_vm0, %v538_v0  ;;  %v423_v3 = vld [vmem:[#allocation5 + $0x28] sm:$0xff]   ;;  %v429_v4 = vld [vmem:[#allocation7 + $0x38] sm:$0xff]   ;;  %v424_v5 = vld [vmem:[#allocation5 + $0x20] sm:$0xff]  }
  0x2a   :  { %391 = vmatprep.subr.bf16.mxu1 %v538_v0  ;;  %407 = vmatprep.mubr.msk.bf16.mxu1 %vm539_vm0, %v538_v0  ;;  %v430_v6 = vld [vmem:[#allocation7 + $0x30] sm:$0xff]   ;;  %v425_v7 = vld [vmem:[#allocation5 + $0x18] sm:$0xff]   ;;  %v431_v8 = vld [vmem:[#allocation7 + $0x28] sm:$0xff]  }
  0x2b   :  { %372 = vmatpush3.bf16.msra.mxu0 %v421_v1  ;;  %392 = vmatpush3.bf16.msra.mxu1 %v429_v4  ;;  %v426_v9 = vld [vmem:[#allocation5 + $0x10] sm:$0xff]   ;;  %v432_v10 = vld [vmem:[#allocation7 + $0x20] sm:$0xff]   ;;  %v427_v11 = vld [vmem:[#allocation5 + $0x8] sm:$0xff]  }
  0x2c   :  { %373 = vmatprep.subr.bf16.mxu0 %v538_v0  ;;  %393 = vmatprep.subr.bf16.mxu1 %v538_v0  ;;  %v433_v12 = vld [vmem:[#allocation7 + $0x18] sm:$0xff]   ;;  %v428_v13 = vld [vmem:[#allocation5] sm:$0xff]   ;;  %v63_v14 = vld [vmem:[#allocation2] sm:$0xff] }
  0x2d   :  { %v64_v15 = vld [vmem:[#allocation2 + $0x8] sm:$0xff]  ;;  %v434_v17 = vld [vmem:[#allocation7 + $0x10] sm:$0xff]   ;;  %v435_v18 = vld [vmem:[#allocation7 + $0x8] sm:$0xff]  }
  0x2e   :  { %v65_v16 = vpack.c.bf16 %v64_v15, %v63_v14  ;;  %v436_v19 = vld [vmem:[#allocation7] sm:$0xff]   ;;  %v335_v20 = vld [vmem:[%s597_s2] ss:$0 sm:$0xff]  ;;  %s540_s2 = smov [#allocation8]  }
  0x2f   :  { %374 = vmatpush3.bf16.msra.mxu0 %v422_v2  ;;  %394 = vmatpush3.bf16.msra.mxu1 %v430_v6  ;;  %v344_v30 = vld [vmem:[%s599_s4] ss:$0 sm:$0xff]  ;;  %s322_s4 = sshll.u32 %s540_s2, 4  ;;  %s323_s4 = int_to_ptr.vmem [resolvable:$true] %s322_s4 }
  0x30   :  { %375 = vmatprep.subr.bf16.mxu0 %v538_v0  ;;  %395 = vmatprep.subr.bf16.mxu1 %v538_v0  ;;  %s505_s13 = scalar_lea.vmem %s323_s4, 256  ;;  %p510_p2 = scmp.lt.s32.totalorder %s323_s4, %s323_s4 }
  0x31   :  { %p506_p1 = scmp.ne.s32.totalorder %s323_s4, %s505_s13  ;;  %p511_p3 = scmp.lt.s32.totalorder %s505_s13, %s505_s13 }
  0x33   :  { %376 = vmatpush3.bf16.msra.mxu0 %v423_v3  ;;  %396 = vmatpush3.bf16.msra.mxu1 %v431_v8  ;;  %p512_p4 = por %p511_p3, %p510_p2 }
  0x34   :  { %377 = vmatprep.subr.bf16.mxu0 %v538_v0  ;;  %397 = vmatprep.subr.bf16.mxu1 %v538_v0 }
  0x35   :  { %p513_p5 = pnand %p512_p4, %p506_p1 }
  0x37   :  { %378 = vmatpush3.bf16.msra.mxu0 %v424_v5  ;;  %398 = vmatpush3.bf16.msra.mxu1 %v432_v10 }
  0x38   :  { %379 = vmatprep.subr.bf16.mxu0 %v538_v0  ;;  %399 = vmatprep.subr.bf16.mxu1 %v538_v0 }
  0x3b   :  { %380 = vmatpush3.bf16.msra.mxu0 %v425_v7  ;;  %400 = vmatpush3.bf16.msra.mxu1 %v433_v12 }
  0x3c   :  { %381 = vmatprep.subr.bf16.mxu0 %v538_v0  ;;  %401 = vmatprep.subr.bf16.mxu1 %v538_v0 }
  0x3f   :  { %382 = vmatpush3.bf16.msra.mxu0 %v426_v9  ;;  %402 = vmatpush3.bf16.msra.mxu1 %v434_v17 }
  0x40   :  { %383 = vmatprep.subr.bf16.mxu0 %v538_v0  ;;  %403 = vmatprep.subr.bf16.mxu1 %v538_v0 }
  0x43   :  { %384 = vmatpush3.bf16.msra.mxu0 %v427_v11  ;;  %404 = vmatpush3.bf16.msra.mxu1 %v435_v18 }
  0x44   :  { %385 = vmatprep.subr.bf16.mxu0 %v538_v0  ;;  %405 = vmatprep.subr.bf16.mxu1 %v538_v0 }
  0x47   :  { %386 = vmatpush3.bf16.msra.mxu0 %v428_v13  ;;  %406 = vmatpush3.bf16.msra.mxu1 %v436_v19 }
  0x4a   :  { %388 = vmatmul.mubr.bf16.vlgmr.msra.gmra.mxu0 %v65_v16 }
 0x10a   :  { %v171_v21 = vpop.f32.mrf.mxu0 }
 0x10b   :  { %v172_v23 = vadd.f32 %v335_v20, %v171_v21 }
 0x10c   :  { %v389_v22 = vpop.f32.mrf.mxu0 }
 0x10d   :  { %v178_v27 = vmax.f32 %v172_v23, 0.0 }
 0x10e   :  { %v174_v24 = vpop.f32.mrf.mxu0 }
 0x10f   :  { %v175_v25 = vadd.f32 %v335_v20, %v174_v24 }
 0x110   :  { %v390_v26 = vpop.f32.mrf.mxu0 }
 0x111   :  { %v179_v28 = vmax.f32 %v175_v25, 0.0 }
 0x113   :  { %v180_v29 = vpack.c.bf16 %v179_v28, %v178_v27 }
 0x115   :  { %408 = vmatmul.mubr.bf16.vlgmr.msra.gmra.mxu1 %v180_v29 }
 0x1d5   :  { %v286_v31 = vpop.f32.mrf.mxu1 }
 0x1d6   :  { %v287_v32 = vadd.f32 %v344_v30, %v286_v31 }
 0x1d7   :  { %v409_v33 = vpop.f32.mrf.mxu1 }
 0x1d8   :  { %293 = vmax.xlane.f32.xlu0 %v287_v32 }
 0x1d9   :  { %v289_v34 = vpop.f32.mrf.mxu1 }
 0x1da   :  { %v290_v35 = vadd.f32 %v344_v30, %v289_v34 }
 0x1db   :  { %v410_v36 = vpop.f32.mrf.mxu1 }
 0x1dc   :  { %295 = vmax.xlane.f32.xlu0 %v290_v35 }
 0x261   :  { %v294_v37 = vpop.xlane.xlu0 %293 }
 0x262   :  { %v297_v38 = vsub.f32 %v287_v32, %v294_v37 }
 0x264   :  { %v299_v39 = vmul.f32 1.442695, %v297_v38 }
 0x265   :  { %v296_v40 = vpop.xlane.xlu0 %295 }
 0x266   :  { %437 = vpow2.f32 %v299_v39  ;;  %v298_v41 = vsub.f32 %v290_v35, %v296_v40 }
 0x268   :  { %v301_v42 = vmul.f32 1.442695, %v298_v41 }
 0x26a   :  { %439 = vpow2.f32 %v301_v42 }
 0x273   :  { %v438_v43 = vpop.eup %437 }
 0x274   :  { %303 = vadd.xlane.f32.xlu1 %v438_v43 }
 0x277   :  { %v440_v44 = vpop.eup %439 }
 0x278   :  { %305 = vadd.xlane.f32.xlu1 %v440_v44 }
 0x2fd   :  { %v304_v45 = vpop.xlane.xlu1 %303 }
 0x2fe   :  { %441 = vlog2.f32 %v304_v45 }
 0x301   :  { %v306_v46 = vpop.xlane.xlu1 %305 }
 0x302   :  { %443 = vlog2.f32 %v306_v46 }
 0x30b   :  { %v442_v47 = vpop.eup %441 }
 0x30c   :  { %v308_v48 = vmul.f32 0.6931472, %v442_v47 }
 0x30e   :  { %v311_v49 = vadd.f32 %v308_v48, %v294_v37 }
 0x30f   :  { %v444_v50 = vpop.eup %443 }
 0x310   :  { %v310_v51 = vmul.f32 0.6931472, %v444_v50  ;;  %v313_v52 = vsub.f32 %v287_v32, %v311_v49 }
 0x312   :  { %v312_v53 = vadd.f32 %v310_v51, %v296_v40  ;;  %315 = vst [vmem:[#allocation8] sm:$0xff] %v313_v52 }
 0x314   :  { %v314_v54 = vsub.f32 %v290_v35, %v312_v53 }
 0x316   :  { %316 = vst [vmem:[#allocation8 + $0x8] sm:$0xff] %v314_v54 }
 0x317   :  { %516 = shalt.err (!%p513_p5)
}
 0x318   :  { %328 = dma.vmem_to_hbm [thread:$0]  %s323_s4, 256, %s600_s5, [#allocation4], %s535_s28, %s535_s28, %s536_s29  }
 0x319   :  { %529 = dma.done.wait [#allocation4], 256  }
 0x31a   :  { %530 = vsyncadd [#allocation4], 4294967040 }
 0x31b   :  { %332 = vsyncpa [#allocation3], 1 }
 0x31c   :  { %333 = vsyncpa [#allocation6], 1 }
 0x31d   :  { %334 = vsyncpa [#allocation4], 1 }

// kernel: tpu_custom_call.1
= control target key start
LH: loop header
LB: loop body
LE: loop exit
PB: predicated region body
PF: predicated region fallthrough
CT: control target
= control target key end

     0   :  { %10 = vsyncpa [#allocation3], 0  ;;  %s595_s0 = inlined_call_operand.hbm [shape: f32[16,128], index: 0, kind: input, shape index: {}]   ;;  %s596_s1 = inlined_call_operand.hbm [shape: bf16[128,128], index: 1, kind: input, shape index: {}]   ;;  %s597_s2 = inlined_call_operand.vmem [shape: f32[1,128], index: 2, kind: input, shape index: {}]   ;;  %s598_s3 = inlined_call_operand.hbm [shape: bf16[128,128], index: 3, kind: input, shape index: {}]   ;;  %s599_s4 = inlined_call_operand.vmem [shape: f32[1,128], index: 4, kind: input, shape index: {}]   ;;  %s600_s5 = inlined_call_operand.hbm [shape: f32[16,128], index: 5, kind: output, shape index: {}]  }
   0x1   :  { %11 = vsyncpa [#allocation6], 0 }
   0x2   :  { %12 = vsyncpa [#allocation4], 0  ;;  %s531_s18 = smov [#allocation5]  }
   0x3   :  { %s30_s19 = sshll.u32 %s531_s18, 4  ;;  %s31_s19 = int_to_ptr.vmem [resolvable:$true] %s30_s19 }
   0x4   :  { %s453_s20 = scalar_lea.vmem %s31_s19, 1024  ;;  %p458_p1 = scmp.lt.s32.totalorder %s31_s19, %s31_s19 }
   0x5   :  { %p454_p0 = scmp.ne.s32.totalorder %s31_s19, %s453_s20  ;;  %p459_p2 = scmp.lt.s32.totalorder %s453_s20, %s453_s20 }
   0x7   :  { %p460_p3 = por %p459_p2, %p458_p1 }
   0x9   :  { %p461_p4 = pnand %p460_p3, %p454_p0 }
   0xb   :  { %464 = shalt.err (!%p461_p4)
}
   0xc   :  { %s532_s21 = smov 64   ;;  %s533_s22 = smov 4  }
   0xd   :  { %36 = dma.hbm_to_vmem [thread:$0]  %s596_s1, 1024, %s31_s19, [#allocation6], %s532_s21, %s532_s21, %s533_s22  }
   0xe   :  { %s534_s25 = smov [#allocation2]  }
   0xf   :  { %s18_s26 = sshll.u32 %s534_s25, 4  ;;  %s19_s26 = int_to_ptr.vmem [resolvable:$true] %s18_s26 }
  0x10   :  { %s473_s27 = scalar_lea.vmem %s19_s26, 256  ;;  %p478_p6 = scmp.lt.s32.totalorder %s19_s26, %s19_s26 }
  0x11   :  { %p474_p5 = scmp.ne.s32.totalorder %s19_s26, %s473_s27  ;;  %p479_p7 = scmp.lt.s32.totalorder %s473_s27, %s473_s27 }
  0x13   :  { %p480_p8 = por %p479_p7, %p478_p6 }
  0x15   :  { %p481_p9 = pnand %p480_p8, %p474_p5 }
  0x17   :  { %484 = shalt.err (!%p481_p9)
}
  0x18   :  { %s535_s28 = smov 128   ;;  %s536_s29 = smov 8  }
  0x19   :  { %24 = dma.hbm_to_vmem [thread:$0]  %s595_s0, 256, %s19_s26, [#allocation3], %s535_s28, %s535_s28, %s536_s29  }
  0x1a   :  { %s537_s1 = smov [#allocation7]  }
  0x1b   :  { %s44_s7 = sshll.u32 %s537_s1, 4  ;;  %s45_s7 = int_to_ptr.vmem [resolvable:$true] %s44_s7 }
  0x1c   :  { %s493_s8 = scalar_lea.vmem %s45_s7, 1024  ;;  %p498_p11 = scmp.lt.s32.totalorder %s45_s7, %s45_s7 }
  0x1d   :  { %p494_p10 = scmp.ne.s32.totalorder %s45_s7, %s493_s8  ;;  %p499_p12 = scmp.lt.s32.totalorder %s493_s8, %s493_s8 }
  0x1f   :  { %p500_p13 = por %p499_p12, %p498_p11 }
  0x21   :  { %p501_p0 = pnand %p500_p13, %p494_p10 }
  0x23   :  { %504 = shalt.err (!%p501_p0)
}
  0x24   :  { %50 = dma.hbm_to_vmem [thread:$0]  %s598_s3, 1024, %s45_s7, [#allocation6], %s532_s21, %s532_s21, %s533_s22  }
  0x25   :  { %525 = dma.done.wait [#allocation3], 256  }
  0x26   :  { %526 = vsyncadd [#allocation3], 4294967040 }
  0x27   :  { %527 = dma.done.wait [#allocation6], 2048  }
  0x28   :  { %528 = vsyncadd [#allocation6], 4294965248  ;;  %v538_v0 = vmov 0.0   ;;  %vm539_vm0 = vmmov 0   ;;  %v421_v1 = vld [vmem:[#allocation5 + $0x38] sm:$0xff]   ;;  %v422_v2 = vld [vmem:[#allocation5 + $0x30] sm:$0xff]  }
  0x29   :  { %371 = vmatprep.subr.bf16.mxu0 %v538_v0  ;;  %387 = vmatprep.mubr.msk.bf16.mxu0 %vm539_vm0, %v538_v0  ;;  %v423_v3 = vld [vmem:[#allocation5 + $0x28] sm:$0xff]   ;;  %v429_v4 = vld [vmem:[#allocation7 + $0x38] sm:$0xff]   ;;  %v424_v5 = vld [vmem:[#allocation5 + $0x20] sm:$0xff]  }
  0x2a   :  { %391 = vmatprep.subr.bf16.mxu1 %v538_v0  ;;  %407 = vmatprep.mubr.msk.bf16.mxu1 %vm539_vm0, %v538_v0  ;;  %v430_v6 = vld [vmem:[#allocation7 + $0x30] sm:$0xff]   ;;  %v425_v7 = vld [vmem:[#allocation5 + $0x18] sm:$0xff]   ;;  %v431_v8 = vld [vmem:[#allocation7 + $0x28] sm:$0xff]  }
  0x2b   :  { %372 = vmatpush3.bf16.msra.mxu0 %v421_v1  ;;  %392 = vmatpush3.bf16.msra.mxu1 %v429_v4  ;;  %v426_v9 = vld [vmem:[#allocation5 + $0x10] sm:$0xff]   ;;  %v432_v10 = vld [vmem:[#allocation7 + $0x20] sm:$0xff]   ;;  %v427_v11 = vld [vmem:[#allocation5 + $0x8] sm:$0xff]  }
  0x2c   :  { %373 = vmatprep.subr.bf16.mxu0 %v538_v0  ;;  %393 = vmatprep.subr.bf16.mxu1 %v538_v0  ;;  %v433_v12 = vld [vmem:[#allocation7 + $0x18] sm:$0xff]   ;;  %v428_v13 = vld [vmem:[#allocation5] sm:$0xff]   ;;  %v63_v14 = vld [vmem:[#allocation2] sm:$0xff] }
  0x2d   :  { %v64_v15 = vld [vmem:[#allocation2 + $0x8] sm:$0xff]  ;;  %v434_v17 = vld [vmem:[#allocation7 + $0x10] sm:$0xff]   ;;  %v435_v18 = vld [vmem:[#allocation7 + $0x8] sm:$0xff]  }
  0x2e   :  { %v65_v16 = vpack.c.bf16 %v64_v15, %v63_v14  ;;  %v436_v19 = vld [vmem:[#allocation7] sm:$0xff]   ;;  %v335_v20 = vld [vmem:[%s597_s2] ss:$0 sm:$0xff]  ;;  %s540_s2 = smov [#allocation8]  }
  0x2f   :  { %374 = vmatpush3.bf16.msra.mxu0 %v422_v2  ;;  %394 = vmatpush3.bf16.msra.mxu1 %v430_v6  ;;  %v344_v30 = vld [vmem:[%s599_s4] ss:$0 sm:$0xff]  ;;  %s322_s4 = sshll.u32 %s540_s2, 4  ;;  %s323_s4 = int_to_ptr.vmem [resolvable:$true] %s322_s4 }
  0x30   :  { %375 = vmatprep.subr.bf16.mxu0 %v538_v0  ;;  %395 = vmatprep.subr.bf16.mxu1 %v538_v0  ;;  %s505_s13 = scalar_lea.vmem %s323_s4, 256  ;;  %p510_p2 = scmp.lt.s32.totalorder %s323_s4, %s323_s4 }
  0x31   :  { %p506_p1 = scmp.ne.s32.totalorder %s323_s4, %s505_s13  ;;  %p511_p3 = scmp.lt.s32.totalorder %s505_s13, %s505_s13 }
  0x33   :  { %376 = vmatpush3.bf16.msra.mxu0 %v423_v3  ;;  %396 = vmatpush3.bf16.msra.mxu1 %v431_v8  ;;  %p512_p4 = por %p511_p3, %p510_p2 }
  0x34   :  { %377 = vmatprep.subr.bf16.mxu0 %v538_v0  ;;  %397 = vmatprep.subr.bf16.mxu1 %v538_v0 }
  0x35   :  { %p513_p5 = pnand %p512_p4, %p506_p1 }
  0x37   :  { %378 = vmatpush3.bf16.msra.mxu0 %v424_v5  ;;  %398 = vmatpush3.bf16.msra.mxu1 %v432_v10 }
  0x38   :  { %379 = vmatprep.subr.bf16.mxu0 %v538_v0  ;;  %399 = vmatprep.subr.bf16.mxu1 %v538_v0 }
  0x3b   :  { %380 = vmatpush3.bf16.msra.mxu0 %v425_v7  ;;  %400 = vmatpush3.bf16.msra.mxu1 %v433_v12 }
  0x3c   :  { %381 = vmatprep.subr.bf16.mxu0 %v538_v0  ;;  %401 = vmatprep.subr.bf16.mxu1 %v538_v0 }
  0x3f   :  { %382 = vmatpush3.bf16.msra.mxu0 %v426_v9  ;;  %402 = vmatpush3.bf16.msra.mxu1 %v434_v17 }
  0x40   :  { %383 = vmatprep.subr.bf16.mxu0 %v538_v0  ;;  %403 = vmatprep.subr.bf16.mxu1 %v538_v0 }
  0x43   :  { %384 = vmatpush3.bf16.msra.mxu0 %v427_v11  ;;  %404 = vmatpush3.bf16.msra.mxu1 %v435_v18 }
  0x44   :  { %385 = vmatprep.subr.bf16.mxu0 %v538_v0  ;;  %405 = vmatprep.subr.bf16.mxu1 %v538_v0 }
  0x47   :  { %386 = vmatpush3.bf16.msra.mxu0 %v428_v13  ;;  %406 = vmatpush3.bf16.msra.mxu1 %v436_v19 }
  0x4a   :  { %388 = vmatmul.mubr.bf16.vlgmr.msra.gmra.mxu0 %v65_v16 }
 0x10a   :  { %v171_v21 = vpop.f32.mrf.mxu0 }
 0x10b   :  { %v172_v23 = vadd.f32 %v335_v20, %v171_v21 }
 0x10c   :  { %v389_v22 = vpop.f32.mrf.mxu0 }
 0x10d   :  { %v178_v27 = vmax.f32 %v172_v23, 0.0 }
 0x10e   :  { %v174_v24 = vpop.f32.mrf.mxu0 }
 0x10f   :  { %v175_v25 = vadd.f32 %v335_v20, %v174_v24 }
 0x110   :  { %v390_v26 = vpop.f32.mrf.mxu0 }
 0x111   :  { %v179_v28 = vmax.f32 %v175_v25, 0.0 }
 0x113   :  { %v180_v29 = vpack.c.bf16 %v179_v28, %v178_v27 }
 0x115   :  { %408 = vmatmul.mubr.bf16.vlgmr.msra.gmra.mxu1 %v180_v29 }
 0x1d5   :  { %v286_v31 = vpop.f32.mrf.mxu1 }
 0x1d6   :  { %v287_v32 = vadd.f32 %v344_v30, %v286_v31 }
 0x1d7   :  { %v409_v33 = vpop.f32.mrf.mxu1 }
 0x1d8   :  { %293 = vmax.xlane.f32.xlu0 %v287_v32 }
 0x1d9   :  { %v289_v34 = vpop.f32.mrf.mxu1 }
 0x1da   :  { %v290_v35 = vadd.f32 %v344_v30, %v289_v34 }
 0x1db   :  { %v410_v36 = vpop.f32.mrf.mxu1 }
 0x1dc   :  { %295 = vmax.xlane.f32.xlu0 %v290_v35 }
 0x261   :  { %v294_v37 = vpop.xlane.xlu0 %293 }
 0x262   :  { %v297_v38 = vsub.f32 %v287_v32, %v294_v37 }
 0x264   :  { %v299_v39 = vmul.f32 1.442695, %v297_v38 }
 0x265   :  { %v296_v40 = vpop.xlane.xlu0 %295 }
 0x266   :  { %437 = vpow2.f32 %v299_v39  ;;  %v298_v41 = vsub.f32 %v290_v35, %v296_v40 }
 0x268   :  { %v301_v42 = vmul.f32 1.442695, %v298_v41 }
 0x26a   :  { %439 = vpow2.f32 %v301_v42 }
 0x273   :  { %v438_v43 = vpop.eup %437 }
 0x274   :  { %303 = vadd.xlane.f32.xlu1 %v438_v43 }
 0x277   :  { %v440_v44 = vpop.eup %439 }
 0x278   :  { %305 = vadd.xlane.f32.xlu1 %v440_v44 }
 0x2fd   :  { %v304_v45 = vpop.xlane.xlu1 %303 }
 0x2fe   :  { %441 = vlog2.f32 %v304_v45 }
 0x301   :  { %v306_v46 = vpop.xlane.xlu1 %305 }
 0x302   :  { %443 = vlog2.f32 %v306_v46 }
 0x30b   :  { %v442_v47 = vpop.eup %441 }
 0x30c   :  { %v308_v48 = vmul.f32 0.6931472, %v442_v47 }
 0x30e   :  { %v311_v49 = vadd.f32 %v308_v48, %v294_v37 }
 0x30f   :  { %v444_v50 = vpop.eup %443 }
 0x310   :  { %v310_v51 = vmul.f32 0.6931472, %v444_v50  ;;  %v313_v52 = vsub.f32 %v287_v32, %v311_v49 }
 0x312   :  { %v312_v53 = vadd.f32 %v310_v51, %v296_v40  ;;  %315 = vst [vmem:[#allocation8] sm:$0xff] %v313_v52 }
 0x314   :  { %v314_v54 = vsub.f32 %v290_v35, %v312_v53 }
 0x316   :  { %316 = vst [vmem:[#allocation8 + $0x8] sm:$0xff] %v314_v54 }
 0x317   :  { %516 = shalt.err (!%p513_p5)
}
 0x318   :  { %328 = dma.vmem_to_hbm [thread:$0]  %s323_s4, 256, %s600_s5, [#allocation4], %s535_s28, %s535_s28, %s536_s29  }
 0x319   :  { %529 = dma.done.wait [#allocation4], 256  }
 0x31a   :  { %530 = vsyncadd [#allocation4], 4294967040 }
 0x31b   :  { %332 = vsyncpa [#allocation3], 1 }
 0x31c   :  { %333 = vsyncpa [#allocation6], 1 }
 0x31d   :  { %334 = vsyncpa [#allocation4], 1 }

</bundles_post_ra>
